<compile_context>
chip_gen: v7x
topology: tpu7x:2x2x1
jax: 0.10.0
libtpu: 0.0.40
codegen_flags: <defaults>
</compile_context>

<pallas_src>
import math

import jax
import jax.numpy as jnp
from jax.experimental import pallas as pl
from jax.experimental.pallas import tpu as pltpu


def _pe_time_kernel(x_ref, t_ref, freq_ref, phase_ref, o_ref):
    # x_ref: (tR, D) in x dtype; t_ref: (tR, 1) f32
    # freq_ref / phase_ref: (1, D) f32, VMEM-resident (constant block index)
    arg = t_ref[...] * freq_ref[...] + phase_ref[...]          # (tR, D) broadcast
    pe = jnp.sin(arg)                                          # cos folded in via +pi/2 phase
    o_ref[...] = (x_ref[...].astype(jnp.float32) + pe).astype(o_ref.dtype)


def positional_encoding_time(x: jax.Array, times: jax.Array, *, base: float = 10000.0) -> jax.Array:
    """x: (B, S, D), times: (B, S) -> (B, S, D), same dtype as x.

    `base` is accepted for signature parity with the PyTorch module but is
    unused there too (the module hard-codes log(10000.0)).
    """
    del base
    B, S, D = x.shape
    assert times.shape == (B, S)
    assert D % 2 == 0, "d_model must be even (matches reference interleave)"
    R = B * S
    out_dtype = x.dtype

    # Flatten to row-major (rows, D); times as a lane-1 column (glue reshapes).
    x2 = x.reshape(R, D)
    t2 = times.astype(jnp.float32).reshape(R, 1)

    # Precomputed per-lane tables:
    #   freq[j]  = exp( 2*(j//2) * (-ln(10000)/D) )
    #   phase[j] = (j % 2) * pi/2        (turns sin into cos on odd lanes)
    j = jnp.arange(D, dtype=jnp.int32)
    freq = jnp.exp((j - (j % 2)).astype(jnp.float32) * (-math.log(10000.0) / float(D)))
    phase = (j % 2).astype(jnp.float32) * (math.pi / 2.0)
    freq = freq.reshape(1, D)
    phase = phase.reshape(1, D)

    # Row-tile sizing: ~4 MiB f32 x-tile (double-buffered in + out stays well
    # under the default scoped VMEM on v5e/v6e/v7x), multiple of 8 sublanes,
    # capped at 2048 rows.
    target_tile_bytes = 4 * 1024 * 1024
    tR = max(8, min(2048, target_tile_bytes // (D * 4)))
    tR = (tR // 8) * 8
    if R <= tR:
        tR = R                      # full extent — exempt from the 8-sublane rule
        R_pad = R
    else:
        R_pad = ((R + tR - 1) // tR) * tR
        if R_pad != R:              # pad rows so the grid divides evenly
            x2 = jnp.pad(x2, ((0, R_pad - R), (0, 0)))
            t2 = jnp.pad(t2, ((0, R_pad - R), (0, 0)))

    grid = (R_pad // tR,)

    # TODO(synk): for D << 128 a lane-dense folded output (rows, k*128) would
    # avoid masked partial stores, but it requires materializing times per-lane
    # (extra HBM read), so it is intentionally not done here.
    out = pl.pallas_call(
        _pe_time_kernel,
        out_shape=jax.ShapeDtypeStruct((R_pad, D), out_dtype),
        grid_spec=pltpu.PrefetchScalarGridSpec(
            num_scalar_prefetch=0,
            grid=grid,
            in_specs=[
                pl.BlockSpec((tR, D), lambda i: (i, 0)),   # x rows
                pl.BlockSpec((tR, 1), lambda i: (i, 0)),   # times column
                pl.BlockSpec((1, D), lambda i: (0, 0)),    # freq table (resident)
                pl.BlockSpec((1, D), lambda i: (0, 0)),    # phase table (resident)
            ],
            out_specs=pl.BlockSpec((tR, D), lambda i: (i, 0)),
        ),
        compiler_params=pltpu.CompilerParams(
            dimension_semantics=("parallel",),
            vmem_limit_bytes=64 * 1024 * 1024,
        ),
    )(x2, t2, freq, phase)

    if R_pad != R:
        out = out[:R]
    return out.reshape(B, S, D)


def _reference(x, times):
    # Pure-JAX reference mirroring the PyTorch forward.
    B, S = times.shape
    D = x.shape[-1]
    freqs = jnp.exp(jnp.arange(0, D, 2, dtype=jnp.float32)
                    * (-math.log(10000.0) / D))              # (D/2,)
    args = times[..., None].astype(jnp.float32) * freqs      # (B, S, D/2)
    pe = jnp.zeros((B, S, D), jnp.float32)
    pe = pe.at[..., 0::2].set(jnp.sin(args))
    pe = pe.at[..., 1::2].set(jnp.cos(args))
    return (x.astype(jnp.float32) + pe).astype(x.dtype)


if __name__ == "__main__":
    key = jax.random.PRNGKey(0)
    kx, kt = jax.random.split(key)

    B, S, D = 2, 8, 32
    x = jax.random.normal(kx, (B, S, D), dtype=jnp.float32)
    times = jax.random.uniform(kt, (B, S), dtype=jnp.float32, minval=0.0, maxval=100.0)

    out = positional_encoding_time(x, times)
    out = jax.block_until_ready(out)

    ref = _reference(x, times)
    assert out.shape == (B, S, D)
    assert out.dtype == x.dtype
    assert jnp.allclose(out, ref, atol=1e-5, rtol=1e-5), "mismatch vs reference"

    print("KERNEL_OK")
</pallas_src>

<mosaic_0001>
module attributes {stable_mosaic.version = 11 : i64} {
  func.func @_pe_time_kernel(%arg0: i32, %arg1: memref<16x32xf32, #tpu.memory_space<vmem>>, %arg2: memref<16x1xf32, #tpu.memory_space<vmem>>, %arg3: memref<1x32xf32, #tpu.memory_space<vmem>>, %arg4: memref<1x32xf32, #tpu.memory_space<vmem>>, %arg5: memref<16x32xf32, #tpu.memory_space<vmem>>) attributes {dimension_semantics = [#tpu.dimension_semantics<parallel>], iteration_bounds = array<i64: 1>, scalar_prefetch = 0 : i64, scratch_operands = 0 : i64, tpu.core_type = #tpu.core_type<tc>, window_params = [{transform_indices = @transform_0, window_bounds = array<i64: 16, 32>}, {transform_indices = @transform_1, window_bounds = array<i64: 16, 1>}, {pipeline_mode = #tpu.pipeline_mode<synchronous>, transform_indices = @transform_2, window_bounds = array<i64: 1, 32>}, {pipeline_mode = #tpu.pipeline_mode<synchronous>, transform_indices = @transform_3, window_bounds = array<i64: 1, 32>}, {transform_indices = @transform_4, window_bounds = array<i64: 16, 32>}]} {
    %c0 = arith.constant 0 : index
    %c0_0 = arith.constant 0 : index
    %0 = vector.load %arg2[%c0, %c0_0] : memref<16x1xf32, #tpu.memory_space<vmem>>, vector<16x1xf32>
    %c0_1 = arith.constant 0 : index
    %c0_2 = arith.constant 0 : index
    %1 = vector.load %arg3[%c0_1, %c0_2] : memref<1x32xf32, #tpu.memory_space<vmem>>, vector<1x32xf32>
    %2 = vector.broadcast %0 : vector<16x1xf32> to vector<16x32xf32>
    %3 = vector.broadcast %1 : vector<1x32xf32> to vector<16x32xf32>
    %4 = arith.mulf %2, %3 : vector<16x32xf32>
    %c0_3 = arith.constant 0 : index
    %c0_4 = arith.constant 0 : index
    %5 = vector.load %arg4[%c0_3, %c0_4] : memref<1x32xf32, #tpu.memory_space<vmem>>, vector<1x32xf32>
    %6 = vector.broadcast %5 : vector<1x32xf32> to vector<16x32xf32>
    %7 = arith.addf %4, %6 : vector<16x32xf32>
    %8 = math.sin %7 : vector<16x32xf32>
    %c0_5 = arith.constant 0 : index
    %c0_6 = arith.constant 0 : index
    %9 = vector.load %arg1[%c0_5, %c0_6] : memref<16x32xf32, #tpu.memory_space<vmem>>, vector<16x32xf32>
    %10 = arith.addf %9, %8 : vector<16x32xf32>
    %c0_7 = arith.constant 0 : index
    %c0_8 = arith.constant 0 : index
    %11 = vector.load %arg5[%c0_7, %c0_8] : memref<16x32xf32, #tpu.memory_space<vmem>>, vector<16x32xf32>
    tpu.vector_store %arg5[%c0_7, %c0_8], %10 {strides = array<i32>} : memref<16x32xf32, #tpu.memory_space<vmem>>, vector<16x32xf32>,
    return
  }
  func.func @transform_0(%arg0: i32) -> (i32, i32) {
    %c0_i32 = arith.constant 0 : i32
    %c0_i32_0 = arith.constant 0 : i32
    return %arg0, %c0_i32 : i32, i32
  }
  func.func @transform_1(%arg0: i32) -> (i32, i32) {
    %c0_i32 = arith.constant 0 : i32
    %c0_i32_0 = arith.constant 0 : i32
    return %arg0, %c0_i32 : i32, i32
  }
  func.func @transform_2(%arg0: i32) -> (i32, i32) {
    %c0_i32 = arith.constant 0 : i32
    %c0_i32_0 = arith.constant 0 : i32
    %c0_i32_1 = arith.constant 0 : i32
    return %c0_i32, %c0_i32_0 : i32, i32
  }
  func.func @transform_3(%arg0: i32) -> (i32, i32) {
    %c0_i32 = arith.constant 0 : i32
    %c0_i32_0 = arith.constant 0 : i32
    %c0_i32_1 = arith.constant 0 : i32
    return %c0_i32, %c0_i32_0 : i32, i32
  }
  func.func @transform_4(%arg0: i32) -> (i32, i32) {
    %c0_i32 = arith.constant 0 : i32
    %c0_i32_0 = arith.constant 0 : i32
    return %arg0, %c0_i32 : i32, i32
  }
}

</mosaic_0001>

<bundles_post_ra>
// kernel: tpu_custom_call.1
= control target key start
LH: loop header
LB: loop body
LE: loop exit
PB: predicated region body
PF: predicated region fallthrough
CT: control target
= control target key end

     0   :  { %9 = vsyncpa [#allocation3], 0  ;;  %s677_s0 = inlined_call_operand.hbm [shape: f32[16,32], index: 0, kind: input, shape index: {}]   ;;  %s678_s1 = inlined_call_operand.hbm [shape: f32[16,1], index: 1, kind: input, shape index: {}]   ;;  %s679_s2 = inlined_call_operand.hbm [shape: f32[1,32], index: 2, kind: input, shape index: {}]   ;;  %s680_s3 = inlined_call_operand.hbm [shape: f32[1,32], index: 3, kind: input, shape index: {}]   ;;  %s681_s4 = inlined_call_operand.hbm [shape: f32[16,32], index: 4, kind: output, shape index: {}]  }
   0x1   :  { %10 = vsyncpa [#allocation6], 0 }
   0x2   :  { %11 = vsyncpa [#allocation9], 0 }
   0x3   :  { %12 = vsyncpa [#allocation4], 0  ;;  %s492_s15 = smov [#allocation5]   ;;  %s493_s17 = smov [#allocation2]  }
   0x4   :  { %s30_s16 = sshll.u32 %s492_s15, 4  ;;  %s18_s18 = sshll.u32 %s493_s17, 4  ;;  %s31_s16 = int_to_ptr.vmem [resolvable:$true] %s30_s16  ;;  %s531_s18 = int_to_ptr.vmem [resolvable:$true] %s18_s18 }
   0x5   :  { %s374_s21 = scalar_lea.hbm %s678_s1, 256 }
   0x6   :  { %p375_p0 = scmp.ne.s32.totalorder %s678_s1, %s374_s21  ;;  %p378_p1 = scmp.lt.u32.totalorder %s374_s21, %s678_s1 }
   0x8   :  { %p380_p2 = pnand %p378_p1, %p375_p0 }
   0xa   :  { %383 = shalt.err (!%p380_p2)
}
   0xb   :  { %s384_s26 = scalar_lea.vmem %s31_s16, 256  ;;  %p389_p4 = scmp.lt.s32.totalorder %s31_s16, %s31_s16 }
   0xc   :  { %p385_p3 = scmp.ne.s32.totalorder %s31_s16, %s384_s26  ;;  %p390_p5 = scmp.lt.s32.totalorder %s384_s26, %s384_s26 }
   0xe   :  { %p391_p6 = por %p390_p5, %p389_p4 }
  0x10   :  { %p392_p7 = pnand %p391_p6, %p385_p3 }
  0x12   :  { %395 = shalt.err (!%p392_p7)
}
  0x13   :  { %s494_s27 = smov 128   ;;  %s495_s28 = smov 8  }
  0x14   :  { %36 = dma.hbm_to_vmem [thread:$0]  %s678_s1, 256, %s31_s16, [#allocation6], %s494_s27, %s494_s27, %s495_s28  }
  0x15   :  { %s396_s7 = scalar_lea.hbm %s677_s0, 256 }
  0x16   :  { %p397_p8 = scmp.ne.s32.totalorder %s677_s0, %s396_s7  ;;  %p400_p9 = scmp.lt.u32.totalorder %s396_s7, %s677_s0 }
  0x18   :  { %p402_p10 = pnand %p400_p9, %p397_p8 }
  0x1a   :  { %405 = shalt.err (!%p402_p10)
}
  0x1b   :  { %s406_s12 = scalar_lea.vmem %s531_s18, 256  ;;  %p411_p12 = scmp.lt.s32.totalorder %s531_s18, %s531_s18 }
  0x1c   :  { %p407_p11 = scmp.ne.s32.totalorder %s531_s18, %s406_s12  ;;  %p412_p13 = scmp.lt.s32.totalorder %s406_s12, %s406_s12 }
  0x1e   :  { %p413_p0 = por %p412_p13, %p411_p12 }
  0x20   :  { %p414_p1 = pnand %p413_p0, %p407_p11 }
  0x22   :  { %417 = shalt.err (!%p414_p1)
}
  0x23   :  { %24 = dma.hbm_to_vmem [thread:$0]  %s677_s0, 256, %s531_s18, [#allocation3], %s494_s27, %s494_s27, %s495_s28  }
  0x24   :  { %s496_s14 = smov [#allocation7]   ;;  %s497_s16 = smov [#allocation8]  }
  0x25   :  { %s43_s15 = sshll.u32 %s496_s14, 4  ;;  %s53_s17 = sshll.u32 %s497_s16, 4  ;;  %s44_s15 = int_to_ptr.vmem [resolvable:$true] %s43_s15  ;;  %s54_s17 = int_to_ptr.vmem [resolvable:$true] %s53_s17 }
  0x26   :  { %s418_s21 = scalar_lea.hbm %s679_s2, 16 }
  0x27   :  { %p419_p2 = scmp.ne.s32.totalorder %s679_s2, %s418_s21  ;;  %p422_p3 = scmp.lt.u32.totalorder %s418_s21, %s679_s2 }
  0x29   :  { %p424_p4 = pnand %p422_p3, %p419_p2 }
  0x2b   :  { %427 = shalt.err (!%p424_p4)
}
  0x2c   :  { %s428_s0 = scalar_lea.vmem %s44_s15, 16  ;;  %s432_s18 = scalar_lea.vmem %s44_s15, 32 }
  0x2d   :  { %p429_p5 = scmp.ne.s32.totalorder %s44_s15, %s428_s0  ;;  %p433_p6 = scmp.lt.s32.totalorder %s44_s15, %s44_s15 }
  0x2e   :  { %p434_p7 = scmp.lt.s32.totalorder %s432_s18, %s428_s0 }
  0x30   :  { %p435_p8 = por %p434_p7, %p433_p6 }
  0x32   :  { %p436_p9 = pnand %p435_p8, %p429_p5 }
  0x34   :  { %439 = shalt.err (!%p436_p9)
}
  0x35   :  { %46 = dma.hbm_to_vmem [thread:$0]  %s679_s2, 16, %s44_s15, [#allocation6]  }
  0x36   :  { %s440_s6 = scalar_lea.hbm %s680_s3, 16 }
  0x37   :  { %p441_p10 = scmp.ne.s32.totalorder %s680_s3, %s440_s6  ;;  %p444_p11 = scmp.lt.u32.totalorder %s440_s6, %s680_s3 }
  0x39   :  { %p446_p12 = pnand %p444_p11, %p441_p10 }
  0x3b   :  { %449 = shalt.err (!%p446_p12)
}
  0x3c   :  { %s450_s11 = scalar_lea.vmem %s54_s17, 16  ;;  %s454_s12 = scalar_lea.vmem %s54_s17, 32 }
  0x3d   :  { %p451_p13 = scmp.ne.s32.totalorder %s54_s17, %s450_s11  ;;  %p455_p0 = scmp.lt.s32.totalorder %s54_s17, %s54_s17 }
  0x3e   :  { %p456_p1 = scmp.lt.s32.totalorder %s454_s12, %s450_s11 }
  0x40   :  { %p457_p2 = por %p456_p1, %p455_p0 }
  0x42   :  { %p458_p3 = pnand %p457_p2, %p451_p13 }
  0x44   :  { %461 = shalt.err (!%p458_p3)
}
  0x45   :  { %56 = dma.hbm_to_vmem [thread:$0]  %s680_s3, 16, %s54_s17, [#allocation9]  }
  0x46   :  { %484 = dma.done.wait [#allocation3], 256  }
  0x47   :  { %485 = vsyncadd [#allocation3], 4294967040 }
  0x48   :  { %486 = dma.done.wait [#allocation6], 272  }
  0x49   :  { %487 = vsyncadd [#allocation6], 4294967024 }
  0x4a   :  { %488 = dma.done.wait [#allocation9], 16  }
  0x4b   :  { %489 = vsyncadd [#allocation9], 4294967280  ;;  %v498_v0 = vmov 0   ;;  %v69_v1 = vld [vmem:[#allocation5] sm:$0xff]  ;;  %v70_v2 = vld [vmem:[#allocation5 + $0x8] sm:$0xff]  ;;  %s505_s3 = smov [#allocation10]  }
  0x4c   :  { %365 = vset.pattern.permute.xlu0 %v498_v0  ;;  %v333_v3 = vld [vmem:[#allocation7] ss:$0 sm:$0xff]  ;;  %v334_v4 = vld [vmem:[#allocation8] ss:$0 sm:$0xff]  ;;  %v499_v27 = vmov 683565275  }
  0x4d   :  { %74 = vperm.xlu0 %365, %v69_v1   ;;  %v500_v31 = vmov 2475754826   ;;  %v501_v33 = vmov 2131351028   ;;  %v502_v35 = vmov 2102212464  }
  0x4e   :  { %v503_v37 = vmov 920167782   ;;  %v504_v44 = vmov 1326507024   ;;  %s319_s13 = sshll.u32 %s505_s3, 4  ;;  %s320_s13 = int_to_ptr.vmem [resolvable:$true] %s319_s13 }
  0x4f   :  { %s462_s14 = scalar_lea.vmem %s320_s13, 256  ;;  %p467_p5 = scmp.lt.s32.totalorder %s320_s13, %s320_s13 }
  0x50   :  { %p463_p4 = scmp.ne.s32.totalorder %s320_s13, %s462_s14  ;;  %p468_p6 = scmp.lt.s32.totalorder %s462_s14, %s462_s14 }
  0x51   :  { %79 = vperm.xlu0 %365, %v70_v2  }
  0x52   :  { %p469_p7 = por %p468_p6, %p467_p5 }
  0x54   :  { %p470_p8 = pnand %p469_p7, %p463_p4 }
  0xcc   :  { %v75_v5 = vpop.permute.xlu0 %74 }
  0xcd   :  { %v88_v6 = vmul.f32 %v333_v3, %v75_v5 }
  0xcf   :  { %v592_v7 = vadd.f32 %v334_v4, %v88_v6 }
  0xd0   :  { %v80_v8 = vpop.permute.xlu0 %79 }
  0xd1   :  { %v99_v9 = vand.u32 2147483647, %v592_v7  ;;  %v102_v10 = vand.u32 2139095040, %v592_v7  ;;  %v89_v11 = vmul.f32 %v333_v3, %v80_v8  ;;  %vm101_vm14 = vcmp.lt.s32.totalorder %v592_v7, 0 }
  0xd3   :  { %v103_v12 = vshrl.u32 %v102_v10, 23  ;;  %v596_v13 = vadd.f32 %v334_v4, %v89_v11  ;;  %v106_v14 = vand.u32 8388607, %v99_v9  ;;  %vm100_vm15 = vcmp.le.f32.partialorder %v99_v9, 0.7853982 }
  0xd5   :  { %v335_v15 = vadd.s32 4294967169, %v103_v12  ;;  %v206_v16 = vand.u32 2139095040, %v596_v13  ;;  %v107_v18 = vor.u32 8388608, %v106_v14  ;;  %v203_v20 = vand.u32 2147483647, %v596_v13 }
  0xd7   :  { %v109_v17 = vadd.s32 1, %v335_v15  ;;  %v207_v19 = vshrl.u32 %v206_v16, 23  ;;  %v602_v25 = vshll.u32 %v107_v18, 8  ;;  %v210_v29 = vand.u32 8388607, %v203_v20 }
  0xd9   :  { %vm110_vm0 = vcmp.gt.s32.totalorder %v109_v17, 0  ;;  %v339_v22 = vadd.s32 4294967169, %v207_v19  ;;  %v211_v59 = vor.u32 8388608, %v210_v29 }
  0xda   :  { %v111_v21 = vsel %vm110_vm0, %v109_v17, 0  ;;  %vm205_vm0 = vcmp.lt.s32.totalorder %v596_v13, 0 }
  0xdb   :  { %v112_v23 = vshrl.u32 %v111_v21, 5  ;;  %v113_v24 = vand.u32 31, %v111_v21  ;;  %v213_v30 = vadd.s32 1, %v339_v22  ;;  %v251_v10 = vshll.u32 %v211_v59, 8 }
  0xdd   :  { %v114_v26 = vsub.s32 32, %v113_v24  ;;  %v116_v28 = vshll.u32 %v499_v27, %v113_v24  ;;  %v119_v32 = vshll.u32 %v500_v31, %v113_v24  ;;  %v122_v34 = vshll.u32 %v501_v33, %v113_v24 }
  0xde   :  { %v125_v36 = vshll.u32 %v502_v35, %v113_v24  ;;  %v128_v38 = vshll.u32 %v503_v37, %v113_v24  ;;  %vm131_vm1 = vcmp.lt.s32.totalorder %v112_v23, 1  ;;  %vm133_vm2 = vcmp.lt.s32.totalorder %v112_v23, 3 }
  0xdf   :  { %v117_v39 = vshrl.u32 %v500_v31, %v114_v26  ;;  %v120_v40 = vshrl.u32 %v501_v33, %v114_v26  ;;  %v123_v41 = vshrl.u32 %v502_v35, %v114_v26  ;;  %v115_v42 = vshrl.u32 %v499_v27, %v114_v26 }
  0xe0   :  { %v126_v43 = vshrl.u32 %v503_v37, %v114_v26  ;;  %v129_v45 = vshrl.u32 %v504_v44, %v114_v26  ;;  %vm214_vm3 = vcmp.gt.s32.totalorder %v213_v30, 0  ;;  %vm134_vm4 = vcmp.lt.s32.totalorder %v112_v23, 4 }
  0xe1   :  { %v118_v46 = vor.u32 %v117_v39, %v116_v28  ;;  %v121_v47 = vor.u32 %v120_v40, %v119_v32  ;;  %v124_v48 = vor.u32 %v123_v41, %v122_v34  ;;  %v215_v51 = vsel %vm214_vm3, %v213_v30, 0 }
  0xe2   :  { %v127_v49 = vor.u32 %v126_v43, %v125_v36  ;;  %v130_v50 = vor.u32 %v129_v45, %v128_v38  ;;  %vm132_vm5 = vcmp.lt.s32.totalorder %v112_v23, 2  ;;  %v217_v62 = vand.u32 31, %v215_v51 }
  0xe3   :  { %v135_v52 = vsel %vm131_vm1, %v115_v42, %v118_v46  ;;  %v136_v53 = vsel %vm134_vm4, %v124_v48, 2102212464  ;;  %v139_v54 = vsel %vm131_vm1, %v118_v46, %v121_v47  ;;  %v143_v55 = vsel %vm131_vm1, %v121_v47, %v124_v48 }
  0xe4   :  { %v137_v56 = vsel %vm133_vm2, %v121_v47, %v136_v53  ;;  %v140_v57 = vsel %vm134_vm4, %v127_v49, 920167782  ;;  %v144_v58 = vsel %vm134_vm4, %v130_v50, 1326507024  ;;  %v216_v6 = vshrl.u32 %v215_v51, 5 }
  0xe5   :  { %v141_v60 = vsel %vm133_vm2, %v124_v48, %v140_v57  ;;  %v145_v61 = vsel %vm133_vm2, %v127_v49, %v144_v58  ;;  %v138_v63 = vsel %vm132_vm5, %v135_v52, %v137_v56  ;;  %v218_v8 = vsub.s32 32, %v217_v62 }
  0xe6   :  { %v142_v0 = vsel %vm132_vm5, %v139_v54, %v141_v60  ;;  %v146_v1 = vsel %vm132_vm5, %v143_v55, %v145_v61  ;;  %v154_v11 = vmul.u32 %v602_v25, %v138_v63  ;;  %v220_v12 = vshll.u32 %v499_v27, %v217_v62 }
  0xe7   :  { %v615_v2 = vmul.u32.u64.low %v602_v25, %v146_v1  ;;  %v616_v3 = vmul.u32.u64.high %v602_v25, %v146_v1, %v615_v2  ;;  %v619_v4 = vmul.u32.u64.low %v602_v25, %v142_v0  ;;  %v620_v5 = vmul.u32.u64.high %v602_v25, %v142_v0, %v619_v4 }
  0xe8   :  { %v223_v14 = vshll.u32 %v500_v31, %v217_v62  ;;  %v226_v15 = vshll.u32 %v501_v33, %v217_v62  ;;  %v221_v16 = vshrl.u32 %v500_v31, %v218_v8  ;;  %v224_v17 = vshrl.u32 %v501_v33, %v218_v8 }
  0xe9   :  { %v227_v18 = vshrl.u32 %v502_v35, %v218_v8  ;;  %v229_v19 = vshll.u32 %v502_v35, %v217_v62  ;;  %vm156_vm6 = vc.u32 %v616_v3, %v619_v4  ;;  %v157_v21 = vadd.s32 1, %v620_v5 }
  0xea   :  { %v230_v22 = vshrl.u32 %v503_v37, %v218_v8  ;;  %v232_v23 = vshll.u32 %v503_v37, %v217_v62  ;;  %v222_v24 = vor.u32 %v221_v16, %v220_v12  ;;  %v225_v26 = vor.u32 %v224_v17, %v223_v14 }
  0xeb   :  { %v228_v28 = vor.u32 %v227_v18, %v226_v15  ;;  %v233_v29 = vshrl.u32 %v504_v44, %v218_v8  ;;  %v158_v25 = vsel %vm156_vm6, %v157_v21, %v620_v5  ;;  %vm235_vm7 = vcmp.lt.s32.totalorder %v216_v6, 1 }
  0xec   :  { %v231_v30 = vor.u32 %v230_v22, %v229_v19  ;;  %vm238_vm8 = vcmp.lt.s32.totalorder %v216_v6, 4  ;;  %v159_v31 = vadd.s32 %v158_v25, %v154_v11  ;;  %vm237_vm9 = vcmp.lt.s32.totalorder %v216_v6, 3 }
  0xed   :  { %v234_v32 = vor.u32 %v233_v29, %v232_v23  ;;  %v240_v33 = vsel %vm238_vm8, %v228_v28, 2102212464  ;;  %v219_v34 = vshrl.u32 %v499_v27, %v218_v8  ;;  %v243_v35 = vsel %vm235_vm7, %v222_v24, %v225_v26 }
  0xee   :  { %v244_v36 = vsel %vm238_vm8, %v231_v30, 920167782  ;;  %v247_v38 = vsel %vm235_vm7, %v225_v26, %v228_v28  ;;  %v160_v39 = vadd.s32 536870912, %v159_v31  ;;  %vm236_vm10 = vcmp.lt.s32.totalorder %v216_v6, 2 }
  0xef   :  { %v245_v37 = vsel %vm237_vm9, %v228_v28, %v244_v36  ;;  %v248_v40 = vsel %vm238_vm8, %v234_v32, 1326507024  ;;  %v239_v41 = vsel %vm235_vm7, %v219_v34, %v222_v24  ;;  %v241_v42 = vsel %vm237_vm9, %v225_v26, %v240_v33 }
  0xf0   :  { %v246_v43 = vsel %vm236_vm10, %v243_v35, %v245_v37  ;;  %v249_v44 = vsel %vm237_vm9, %v231_v30, %v248_v40  ;;  %v161_v45 = vshrl.u32 %v160_v39, 30  ;;  %v242_v51 = vsel %vm236_vm10, %v239_v41, %v241_v42 }
  0xf1   :  { %v250_v46 = vsel %vm236_vm10, %v247_v38, %v249_v44  ;;  %v630_v47 = vmul.u32.u64.low %v251_v10, %v246_v43  ;;  %v631_v48 = vmul.u32.u64.high %v251_v10, %v246_v43, %v630_v47  ;;  %v258_v54 = vmul.u32 %v251_v10, %v242_v51 }
  0xf2   :  { %v633_v49 = vmul.u32.u64.low %v251_v10, %v250_v46  ;;  %v634_v50 = vmul.u32.u64.high %v251_v10, %v250_v46, %v633_v49  ;;  %v162_v27 = vshll.u32 %v161_v45, 30  ;;  %v155_v2 = vadd.s32 %v619_v4, %v616_v3 }
  0xf3   :  { %v261_v53 = vadd.s32 1, %v631_v48  ;;  %v185_v24 = vsub.s32 4, %v161_v45  ;;  %vm649_vm1 = vcmp.le.f32.partialorder %v203_v20, 0.7853982  ;;  %vm191_vm5 = vweird.f32 %v592_v7 }
  0xf4   :  { %v163_v52 = vsub.s32 %v159_v31, %v162_v27  ;;  %vm260_vm11 = vc.u32 %v634_v50, %v630_v47  ;;  %v259_v3 = vadd.s32 %v630_v47, %v634_v50  ;;  %vm311_vm6 = vcmask 261120  }
  0xf5   :  { %v262_v56 = vsel %vm260_vm11, %v261_v53, %v631_v48  ;;  %v186_v33 = vsel %vm101_vm14, %v185_v24, %v161_v45  ;;  %vm295_vm10 = vweird.f32 %v596_v13 }
  0xf6   :  { %v165_v55 = vsub.s32 0, %v163_v52  ;;  %v263_v57 = vadd.s32 %v262_v56, %v258_v54  ;;  %v188_v39 = vsel %vm100_vm15, 0, %v186_v33  ;;  %v307_v54 = vld [vmem:[#allocation2] sm:$0xff] }
  0xf7   :  { %v192_v41 = vadd.s32 3, %v188_v39 }
  0xf8   :  { %v336_v58 = vmin.u32 %v165_v55, %v163_v52  ;;  %v264_v59 = vadd.s32 536870912, %v263_v57 }
  0xf9   :  { %v193_v46 = vand.u32 3, %v192_v41 }
  0xfa   :  { %v167_v60 = vclz %v336_v58  ;;  %v265_v61 = vshrl.u32 %v264_v59, 30 }
  0xfb   :  { %vm198_vm2 = vcmp.eq.s32.totalorder %v193_v46, 2  ;;  %vm195_vm3 = vcmp.eq.s32.totalorder %v193_v46, 0  ;;  %vm194_vm4 = vcmp.lt.s32.totalorder %v193_v46, 2 }
  0xfc   :  { %v337_v62 = vadd.s32 4294967294, %v167_v60  ;;  %v266_v63 = vshll.u32 %v265_v61, 30  ;;  %v289_v43 = vsub.s32 4, %v265_v61 }
  0xfe   :  { %vm338_vm12 = vcmp.lt.s32.totalorder %v337_v62, 0  ;;  %v267_v1 = vsub.s32 %v263_v57, %v266_v63  ;;  %v290_v47 = vsel %vm205_vm0, %v289_v43, %v265_v61 }
  0xff   :  { %v170_v0 = vsel %vm338_vm12, 0, %v337_v62 }
 0x100   :  { %v171_v5 = vsub.s32 32, %v170_v0  ;;  %v175_v6 = vsub.s32 4294967266, %v170_v0  ;;  %v269_v8 = vsub.s32 0, %v267_v1  ;;  %v172_v10 = vshll.u32 %v163_v52, %v170_v0 }
 0x101   :  { %v292_v52 = vsel %vm649_vm1, 0, %v290_v47 }
 0x102   :  { %v173_v11 = vshrl.u32 %v155_v2, %v171_v5  ;;  %v176_v12 = vadd.s32 127, %v175_v6  ;;  %v340_v14 = vmin.u32 %v269_v8, %v267_v1  ;;  %v296_v56 = vadd.s32 3, %v292_v52  ;;  %v308_v2 = vld [vmem:[#allocation2 + $0x8] sm:$0xff] }
 0x104   :  { %v174_v15 = vor.u32 %v173_v11, %v172_v10  ;;  %v177_v16 = vshll.u32 %v176_v12, 23  ;;  %v271_v17 = vclz %v340_v14  ;;  %v297_v59 = vand.u32 3, %v296_v56 }
 0x106   :  { %v178_v18 = vor.u32 4788187, %v177_v16  ;;  %v341_v19 = vadd.s32 4294967294, %v271_v17  ;;  %v181_v22 = vcvt.s32.f32 %v174_v15  ;;  %vm302_vm7 = vcmp.eq.s32.totalorder %v297_v59, 2 }
 0x107   :  { %vm299_vm8 = vcmp.eq.s32.totalorder %v297_v59, 0  ;;  %vm298_vm9 = vcmp.lt.s32.totalorder %v297_v59, 2 }
 0x108   :  { %v179_v21 = vand.u32 2147483647, %v178_v18  ;;  %vm342_vm13 = vcmp.lt.s32.totalorder %v341_v19, 0 }
 0x109   :  { %v274_v26 = vsel %vm342_vm13, 0, %v341_v19 }
 0x10a   :  { %v182_v23 = vmul.f32 %v181_v22, %v179_v21  ;;  %v275_v4 = vsub.s32 32, %v274_v26  ;;  %v279_v28 = vsub.s32 4294967266, %v274_v26  ;;  %v276_v25 = vshll.u32 %v267_v1, %v274_v26 }
 0x10c   :  { %v183_v29 = vxor.u32 2147483648, %v182_v23  ;;  %v277_v30 = vshrl.u32 %v259_v3, %v275_v4  ;;  %v280_v31 = vadd.s32 127, %v279_v28 }
 0x10e   :  { %v184_v32 = vsel %vm101_vm14, %v183_v29, %v182_v23  ;;  %v278_v35 = vor.u32 %v277_v30, %v276_v25  ;;  %v281_v36 = vshll.u32 %v280_v31, 23 }
 0x10f   :  { %v187_v34 = vsel %vm100_vm15, %v592_v7, %v184_v32 }
 0x110   :  { %366 = vcosq.f32 %v187_v34  ;;  %v282_v38 = vor.u32 4788187, %v281_v36  ;;  %v285_v40 = vcvt.s32.f32 %v278_v35 }
 0x111   :  { %368 = vsinq.f32 %v187_v34 }
 0x112   :  { %v283_v37 = vand.u32 2147483647, %v282_v38 }
 0x114   :  { %v286_v42 = vmul.f32 %v285_v40, %v283_v37 }
 0x116   :  { %v287_v44 = vxor.u32 2147483648, %v286_v42 }
 0x118   :  { %v288_v45 = vsel %vm205_vm0, %v287_v44, %v286_v42 }
 0x119   :  { %v291_v49 = vsel %vm649_vm1, %v596_v13, %v288_v45 }
 0x11a   :  { %v367_v48 = vpop.eup %366  ;;  %370 = vcosq.f32 %v291_v49 }
 0x11b   :  { %v369_v50 = vpop.eup %368  ;;  %v199_v27 = vxor.u32 2147483648, %v367_v48  ;;  %372 = vsinq.f32 %v291_v49 }
 0x11c   :  { %v196_v51 = vxor.u32 2147483648, %v369_v50 }
 0x11d   :  { %v200_v20 = vsel %vm198_vm2, %v199_v27, %v369_v50 }
 0x11e   :  { %v197_v53 = vsel %vm195_vm3, %v367_v48, %v196_v51 }
 0x11f   :  { %v201_v55 = vsel %vm194_vm4, %v197_v53, %v200_v20 }
 0x120   :  { %v202_v57 = vsel %vm191_vm5, nan, %v201_v55 }
 0x121   :  { %v309_v58 = vadd.f32 %v307_v54, %v202_v57 }
 0x123   :  { %312 = vst.msk [vmem:[#allocation10] sm:$0xff] %vm311_vm6, %v309_v58 }
 0x124   :  { %v371_v60 = vpop.eup %370 }
 0x125   :  { %v373_v61 = vpop.eup %372  ;;  %v303_v62 = vxor.u32 2147483648, %v371_v60 }
 0x126   :  { %v300_v63 = vxor.u32 2147483648, %v373_v61 }
 0x127   :  { %v304_v0 = vsel %vm302_vm7, %v303_v62, %v373_v61 }
 0x128   :  { %v301_v1 = vsel %vm299_vm8, %v371_v60, %v300_v63 }
 0x129   :  { %v305_v7 = vsel %vm298_vm9, %v301_v1, %v304_v0 }
 0x12a   :  { %v306_v5 = vsel %vm295_vm10, nan, %v305_v7 }
 0x12b   :  { %v310_v6 = vadd.f32 %v308_v2, %v306_v5 }
 0x12d   :  { %313 = vst.msk [vmem:[#allocation10 + $0x8] sm:$0xff] %vm311_vm6, %v310_v6 }
 0x12e   :  { %473 = shalt.err (!%p470_p8)
}
 0x12f   :  { %s474_s17 = scalar_lea.hbm %s681_s4, 256 }
 0x130   :  { %p475_p9 = scmp.ne.s32.totalorder %s681_s4, %s474_s17  ;;  %p478_p10 = scmp.lt.u32.totalorder %s474_s17, %s681_s4 }
 0x132   :  { %p480_p11 = pnand %p478_p10, %p475_p9 }
 0x134   :  { %483 = shalt.err (!%p480_p11)
}
 0x135   :  { %325 = dma.vmem_to_hbm [thread:$0]  %s320_s13, 256, %s681_s4, [#allocation4], %s494_s27, %s494_s27, %s495_s28  }
 0x136   :  { %490 = dma.done.wait [#allocation4], 256  }
 0x137   :  { %491 = vsyncadd [#allocation4], 4294967040 }
 0x138   :  { %329 = vsyncpa [#allocation3], 1 }
 0x139   :  { %330 = vsyncpa [#allocation6], 1 }
 0x13a   :  { %331 = vsyncpa [#allocation9], 1 }
 0x13b   :  { %332 = vsyncpa [#allocation4], 1 }

</bundles_post_ra>
